<compile_context>
chip_gen: v5e
topology: v5e:2x2
jax: 0.10.0
libtpu: 0.0.40
codegen_flags: <defaults>
</compile_context>

<pallas_src>
import functools

import jax
import jax.numpy as jnp
from jax.experimental import pallas as pl
from jax.experimental.pallas import tpu as pltpu

MUSIC_LENGTH = 32          # input features
HIDDEN = 2 * MUSIC_LENGTH  # 64
LANE = 128


def _sigmoid_via_tanh(x):
    # sigmoid(x) == 0.5 * tanh(0.5 * x) + 0.5 : single EUP transcendental.
    # Dtype-preserving (bf16 in, bf16 out on v6e/v7x).
    return 0.5 * jnp.tanh(0.5 * x) + 0.5


def _cyqnn_kernel(x_ref, w1_ref, w2_ref, w3d_ref, o_ref, *, bf16_act):
    """x_ref: (32, TB) bf16 feature-major; weights bf16; o_ref: (1, TB) f32."""
    # fc1: (64, 32) @ (32, TB) -> (64, TB), f32 accumulation on the MXU.
    a1 = jnp.dot(w1_ref[...], x_ref[...], preferred_element_type=jnp.float32)
    if bf16_act:
        h1 = _sigmoid_via_tanh(a1.astype(jnp.bfloat16))     # bf16 EUP/VPU
    else:
        h1 = _sigmoid_via_tanh(a1).astype(jnp.bfloat16)     # f32 EUP (v5e)

    # fc2: (64, 64) @ (64, TB) -> (64, TB).
    a2 = jnp.dot(w2_ref[...], h1, preferred_element_type=jnp.float32)
    if bf16_act:
        h2 = _sigmoid_via_tanh(a2.astype(jnp.bfloat16))
    else:
        h2 = _sigmoid_via_tanh(a2).astype(jnp.bfloat16)

    # fc3 + 2-class softmax == sigmoid of the logit difference (exact).
    d = jnp.dot(w3d_ref[...], h2, preferred_element_type=jnp.float32)  # (1,TB)
    o_ref[...] = _sigmoid_via_tanh(d).astype(o_ref.dtype)


@functools.partial(jax.jit, static_argnames=("block_b", "bf16_act"))
def _cyqnn_forward_impl(x, w1, w2, w3, *, block_b, bf16_act):
    B, F = x.shape
    assert F == MUSIC_LENGTH

    # Single fused transpose+cast pass over x; NO jnp.pad (edge blocks are
    # padded by Pallas, and padded lanes are discarded below).
    xt = x.T.astype(jnp.bfloat16)                              # (32, B)
    w1b = w1.astype(jnp.bfloat16)                              # (64, 32)
    w2b = w2.astype(jnp.bfloat16)                              # (64, 64)
    w3d = (w3[0:1, :] - w3[1:2, :]).astype(jnp.bfloat16)       # (1, 64)

    # Lane-aligned batch tile.  Cap at ~half the lane-rounded batch so the
    # grid has >= 2 steps whenever possible (v7x megacore sharding).
    block_b = max(LANE, (block_b // LANE) * LANE)
    tb_half = pl.cdiv(B, 2 * LANE) * LANE
    tb = max(LANE, min(block_b, tb_half))
    grid = (pl.cdiv(B, tb),)

    cost = pl.CostEstimate(
        flops=2 * B * (MUSIC_LENGTH * HIDDEN + HIDDEN * HIDDEN + HIDDEN),
        transcendentals=B * (2 * HIDDEN + 1),
        bytes_accessed=B * (MUSIC_LENGTH * 2 + 4)
        + (HIDDEN * MUSIC_LENGTH + HIDDEN * HIDDEN + HIDDEN) * 2,
    )

    p0 = pl.pallas_call(
        functools.partial(_cyqnn_kernel, bf16_act=bf16_act),
        out_shape=jax.ShapeDtypeStruct((1, B), jnp.float32),
        grid=grid,
        in_specs=[
            pl.BlockSpec((MUSIC_LENGTH, tb), lambda i: (0, i)),  # x tile
            pl.BlockSpec(w1b.shape, lambda i: (0, 0)),           # resident
            pl.BlockSpec(w2b.shape, lambda i: (0, 0)),           # resident
            pl.BlockSpec(w3d.shape, lambda i: (0, 0)),           # resident
        ],
        out_specs=pl.BlockSpec((1, tb), lambda i: (0, i)),
        compiler_params=pltpu.CompilerParams(
            dimension_semantics=("parallel",),
            # Safe on every generation (v7x has 64 MiB physical VMEM/TC);
            # footprint even at tb=8192 is only a few MiB.
            vmem_limit_bytes=32 * 1024 * 1024,
        ),
        cost_estimate=cost,
    )(xt, w1b, w2b, w3d)

    p0 = p0[0, :]                                              # (B,)
    return jnp.stack([p0, 1.0 - p0], axis=1)                   # (B, 2)


def _bf16_activation_supported():
    """bf16 EUP/VPU exist on v6e/v7x; keep f32 activations elsewhere."""
    try:
        kind = jax.devices()[0].device_kind.lower()
    except Exception:
        return False
    return ("v6" in kind) or ("v7" in kind)


def cyqnn_forward(x, w1, w2, w3, *, block_b=4096, bf16_act=None):
    """x: (B, 32) f32; w1: (64, 32), w2: (64, 64), w3: (2, 64) PyTorch layout.

    Returns (B, 2) f32 probabilities (rows sum to 1)."""
    if bf16_act is None:
        bf16_act = _bf16_activation_supported()
    return _cyqnn_forward_impl(x, w1, w2, w3,
                               block_b=int(block_b), bf16_act=bool(bf16_act))


def init_params(key):
    """Deterministic N(0,1) init matching the module's .normal_(0, 1)."""
    k1, k2, k3 = jax.random.split(key, 3)
    w1 = jax.random.normal(k1, (HIDDEN, MUSIC_LENGTH), jnp.float32)
    w2 = jax.random.normal(k2, (HIDDEN, HIDDEN), jnp.float32)
    w3 = jax.random.normal(k3, (2, HIDDEN), jnp.float32)
    return w1, w2, w3


if __name__ == "__main__":
    key = jax.random.PRNGKey(0)
    kx, kp = jax.random.split(key)
    w1, w2, w3 = init_params(kp)
    bf16_act = _bf16_activation_supported()

    def quant_ref(x):
        # Mirrors kernel numerics: bf16 MXU operands, f32 accumulation,
        # optional bf16 activations, exact 2-class softmax.
        def q(a):
            return a.astype(jnp.bfloat16).astype(jnp.float32)
        act = (lambda a: q(jax.nn.sigmoid(a))) if bf16_act else jax.nn.sigmoid
        h1 = act(q(x) @ q(w1).T)
        h2 = act(q(h1) @ q(w2).T)
        d = q(h2) @ q(w3[0:1, :] - w3[1:2, :]).T                # (B, 1)
        p0 = jax.nn.sigmoid(d)
        return jnp.concatenate([p0, 1.0 - p0], axis=1)

    def f32_ref(x):
        return jax.nn.softmax(
            jax.nn.sigmoid(jax.nn.sigmoid(x @ w1.T) @ w2.T) @ w3.T, axis=1)

    # bf16 hardware tanh differs slightly from the f32-sigmoid-then-quantize
    # reference, so loosen the bound on that path.
    quant_tol = 8e-2 if bf16_act else 2e-2

    # B=37: single grid step + lane padding.  B=300: 2 grid steps + partial
    # edge block (exercises megacore sharding and edge-block padding).
    for B in (37, 300):
        x = jax.random.normal(jax.random.fold_in(kx, B),
                              (B, MUSIC_LENGTH), jnp.float32)
        out = jax.block_until_ready(cyqnn_forward(x, w1, w2, w3))
        assert out.shape == (B, 2)
        assert jnp.allclose(jnp.sum(out, axis=1), 1.0, atol=1e-5)
        assert jnp.max(jnp.abs(out - quant_ref(x))) < quant_tol
        # Loose sanity check vs plain f32 math (bf16 operands/activations).
        assert jnp.max(jnp.abs(out - f32_ref(x))) < 0.15

    print("KERNEL_OK")
</pallas_src>

<mosaic_0001>
module attributes {stable_mosaic.version = 11 : i64} {
  func.func @_cyqnn_kernel(%arg0: i32, %arg1: memref<32x128xbf16, #tpu.memory_space<vmem>>, %arg2: memref<64x32xbf16, #tpu.memory_space<vmem>>, %arg3: memref<64x64xbf16, #tpu.memory_space<vmem>>, %arg4: memref<1x64xbf16, #tpu.memory_space<vmem>>, %arg5: memref<1x128xf32, #tpu.memory_space<vmem>>) attributes {dimension_semantics = [#tpu.dimension_semantics<parallel>], iteration_bounds = array<i64: 1>, scalar_prefetch = 0 : i64, scratch_operands = 0 : i64, tpu.core_type = #tpu.core_type<tc>, window_params = [{transform_indices = @transform_0, window_bounds = array<i64: 32, 128>}, {pipeline_mode = #tpu.pipeline_mode<synchronous>, transform_indices = @transform_1, window_bounds = array<i64: 64, 32>}, {pipeline_mode = #tpu.pipeline_mode<synchronous>, transform_indices = @transform_2, window_bounds = array<i64: 64, 64>}, {pipeline_mode = #tpu.pipeline_mode<synchronous>, transform_indices = @transform_3, window_bounds = array<i64: 1, 64>}, {transform_indices = @transform_4, window_bounds = array<i64: 1, 128>}]} {
    %c0 = arith.constant 0 : index
    %c0_0 = arith.constant 0 : index
    %0 = vector.load %arg2[%c0, %c0_0] : memref<64x32xbf16, #tpu.memory_space<vmem>>, vector<64x32xbf16>
    %c0_1 = arith.constant 0 : index
    %c0_2 = arith.constant 0 : index
    %1 = vector.load %arg1[%c0_1, %c0_2] : memref<32x128xbf16, #tpu.memory_space<vmem>>, vector<32x128xbf16>
    %cst = arith.constant dense<0.000000e+00> : vector<64x128xf32>
    %2 = tpu.matmul %0, %1, %cst {dimension_numbers = #tpu.dot_dimension_numbers<[1], [0], [0], [1], [0, 0, 1, 1], [], []>} : vector<64x32xbf16>, vector<32x128xbf16>, vector<64x128xf32> -> vector<64x128xf32>
    %cst_3 = arith.constant 5.000000e-01 : f32
    %3 = vector.broadcast %cst_3 : f32 to vector<64x128xf32>
    %4 = arith.mulf %3, %2 : vector<64x128xf32>
    %5 = math.tanh %4 : vector<64x128xf32>
    %cst_4 = arith.constant 5.000000e-01 : f32
    %6 = vector.broadcast %cst_4 : f32 to vector<64x128xf32>
    %7 = arith.mulf %6, %5 : vector<64x128xf32>
    %cst_5 = arith.constant 5.000000e-01 : f32
    %8 = vector.broadcast %cst_5 : f32 to vector<64x128xf32>
    %9 = arith.addf %7, %8 : vector<64x128xf32>
    %10 = arith.truncf %9 : vector<64x128xf32> to vector<64x128xbf16>
    %c0_6 = arith.constant 0 : index
    %c0_7 = arith.constant 0 : index
    %11 = vector.load %arg3[%c0_6, %c0_7] : memref<64x64xbf16, #tpu.memory_space<vmem>>, vector<64x64xbf16>
    %cst_8 = arith.constant dense<0.000000e+00> : vector<64x128xf32>
    %12 = tpu.matmul %11, %10, %cst_8 {dimension_numbers = #tpu.dot_dimension_numbers<[1], [0], [0], [1], [0, 0, 1, 1], [], []>} : vector<64x64xbf16>, vector<64x128xbf16>, vector<64x128xf32> -> vector<64x128xf32>
    %cst_9 = arith.constant 5.000000e-01 : f32
    %13 = vector.broadcast %cst_9 : f32 to vector<64x128xf32>
    %14 = arith.mulf %13, %12 : vector<64x128xf32>
    %15 = math.tanh %14 : vector<64x128xf32>
    %cst_10 = arith.constant 5.000000e-01 : f32
    %16 = vector.broadcast %cst_10 : f32 to vector<64x128xf32>
    %17 = arith.mulf %16, %15 : vector<64x128xf32>
    %cst_11 = arith.constant 5.000000e-01 : f32
    %18 = vector.broadcast %cst_11 : f32 to vector<64x128xf32>
    %19 = arith.addf %17, %18 : vector<64x128xf32>
    %20 = arith.truncf %19 : vector<64x128xf32> to vector<64x128xbf16>
    %c0_12 = arith.constant 0 : index
    %c0_13 = arith.constant 0 : index
    %21 = vector.load %arg4[%c0_12, %c0_13] : memref<1x64xbf16, #tpu.memory_space<vmem>>, vector<1x64xbf16>
    %cst_14 = arith.constant dense<0.000000e+00> : vector<1x128xf32>
    %22 = tpu.matmul %21, %20, %cst_14 {dimension_numbers = #tpu.dot_dimension_numbers<[1], [0], [0], [1], [0, 0, 1, 1], [], []>} : vector<1x64xbf16>, vector<64x128xbf16>, vector<1x128xf32> -> vector<1x128xf32>
    %cst_15 = arith.constant 5.000000e-01 : f32
    %23 = vector.broadcast %cst_15 : f32 to vector<1x128xf32>
    %24 = arith.mulf %23, %22 : vector<1x128xf32>
    %25 = math.tanh %24 : vector<1x128xf32>
    %cst_16 = arith.constant 5.000000e-01 : f32
    %26 = vector.broadcast %cst_16 : f32 to vector<1x128xf32>
    %27 = arith.mulf %26, %25 : vector<1x128xf32>
    %cst_17 = arith.constant 5.000000e-01 : f32
    %28 = vector.broadcast %cst_17 : f32 to vector<1x128xf32>
    %29 = arith.addf %27, %28 : vector<1x128xf32>
    %c0_18 = arith.constant 0 : index
    %c0_19 = arith.constant 0 : index
    %30 = vector.load %arg5[%c0_18, %c0_19] : memref<1x128xf32, #tpu.memory_space<vmem>>, vector<1x128xf32>
    tpu.vector_store %arg5[%c0_18, %c0_19], %29 {strides = array<i32>} : memref<1x128xf32, #tpu.memory_space<vmem>>, vector<1x128xf32>,
    return
  }
  func.func @transform_0(%arg0: i32) -> (i32, i32) {
    %c0_i32 = arith.constant 0 : i32
    %c0_i32_0 = arith.constant 0 : i32
    return %c0_i32, %arg0 : i32, i32
  }
  func.func @transform_1(%arg0: i32) -> (i32, i32) {
    %c0_i32 = arith.constant 0 : i32
    %c0_i32_0 = arith.constant 0 : i32
    %c0_i32_1 = arith.constant 0 : i32
    return %c0_i32, %c0_i32_0 : i32, i32
  }
  func.func @transform_2(%arg0: i32) -> (i32, i32) {
    %c0_i32 = arith.constant 0 : i32
    %c0_i32_0 = arith.constant 0 : i32
    %c0_i32_1 = arith.constant 0 : i32
    return %c0_i32, %c0_i32_0 : i32, i32
  }
  func.func @transform_3(%arg0: i32) -> (i32, i32) {
    %c0_i32 = arith.constant 0 : i32
    %c0_i32_0 = arith.constant 0 : i32
    %c0_i32_1 = arith.constant 0 : i32
    return %c0_i32, %c0_i32_0 : i32, i32
  }
  func.func @transform_4(%arg0: i32) -> (i32, i32) {
    %c0_i32 = arith.constant 0 : i32
    %c0_i32_0 = arith.constant 0 : i32
    return %c0_i32, %arg0 : i32, i32
  }
}

</mosaic_0001>

<bundles_post_ra>
// kernel: _cyqnn_forward_impl.1
= control target key start
LH: loop header
LB: loop body
LE: loop exit
PB: predicated region body
PF: predicated region fallthrough
CT: control target
= control target key end

     0   :  { %vm62_vm0 = vcmask 261120   ;;  %vm168_vm1 = vcmask 523264   ;;  %s441_s0 = inlined_call_operand.vmem [shape: bf16[32,37], index: 0, kind: input, shape index: {}]   ;;  %s442_s1 = inlined_call_operand.vmem [shape: bf16[64,32], index: 1, kind: input, shape index: {}]   ;;  %s443_s2 = inlined_call_operand.vmem [shape: bf16[64,64], index: 2, kind: input, shape index: {}]   ;;  %s444_s3 = inlined_call_operand.vmem [shape: bf16[1,64], index: 3, kind: input, shape index: {}]   ;;  %s445_s4 = inlined_call_operand.vmem [shape: f32[1,37], index: 4, kind: output, shape index: {}]  }
   0x1   :  { %v326_v0 = vld [vmem:[%s441_s0 + $0x8] sm:$0xff]  ;;  %v325_v1 = vld [vmem:[%s441_s0] sm:$0xff]  ;;  %v324_v3 = vld [vmem:[%s442_s1 + $0x18] sm:$0xff] }
   0x2   :  { %81 = vmatpush.bf16.msra.mxu0 %v326_v0  ;;  %331 = vmatpush.bf16.msra.mxu1 %v326_v0  ;;  %v321_v2 = vld [vmem:[%s442_s1] sm:$0xff]  ;;  %v322_v4 = vld [vmem:[%s442_s1 + $0x8] sm:$0xff]  ;;  %v323_v5 = vld [vmem:[%s442_s1 + $0x10] sm:$0xff] }
   0x3   :  { %v328_v50 = vld [vmem:[%s443_s2 + $0x8] sm:$0xff]  ;;  %v327_v51 = vld [vmem:[%s443_s2] sm:$0xff]  ;;  %v329_v52 = vld [vmem:[%s443_s2 + $0x10] sm:$0xff] }
   0x4   :  { %v330_v53 = vld [vmem:[%s443_s2 + $0x18] sm:$0xff] }
   0x6   :  { %82 = vmatpush.bf16.msra.mxu0 %v325_v1  ;;  %332 = vmatpush.bf16.msra.mxu1 %v325_v1 }
   0x9   :  { %296 = vmatmul.msk.bf16.vlgmr.msra.gmra.mxu0 %vm62_vm0, %v321_v2  ;;  %299 = vmatmul.msk.bf16.vlgmr.msra.gmra.mxu1 %vm62_vm0, %v324_v3 }
  0x19   :  { %297 = vmatmul.msk.bf16.gmra.mxu0 %vm62_vm0, %v322_v4 }
  0x29   :  { %298 = vmatmul.msk.bf16.gmra.mxu0 %vm62_vm0, %v323_v5 }
  0x86   :  { %v84_v6 = vpop.f32.mrf.mxu0  ;;  %v99_v7 = vpop.f32.mrf.mxu1 }
  0x87   :  { %v110_v8 = vmul.f32 0.5, %v99_v7  ;;  %v104_v28 = vmul.f32 0.5, %v84_v6 }
  0x89   :  { %341 = vtanh.f32 %v110_v8 }
  0x8e   :  { %v86_v9 = vpop.f32.mrf.mxu0  ;;  %v101_v10 = vpop.f32.mrf.mxu1 }
  0x8f   :  { %v111_v11 = vmul.f32 0.5, %v101_v10  ;;  %v342_v12 = vpop.eup %341  ;;  %v105_v26 = vmul.f32 0.5, %v86_v9 }
  0x90   :  { %v126_v13 = vmul.f32 0.5, %v342_v12 }
  0x91   :  { %343 = vtanh.f32 %v111_v11 }
  0x92   :  { %v134_v16 = vadd.f32 0.5, %v126_v13 }
  0x96   :  { %v89_v14 = vpop.f32.mrf.mxu0 }
  0x97   :  { %v344_v15 = vpop.eup %343  ;;  %v106_v24 = vmul.f32 0.5, %v89_v14 }
  0x98   :  { %v127_v17 = vmul.f32 0.5, %v344_v15 }
  0x9a   :  { %v135_v18 = vadd.f32 0.5, %v127_v17 }
  0x9c   :  { %v139_v19 = vpack.c.bf16 %v135_v18, %v134_v16 }
  0x9e   :  { %v91_v20 = vpop.f32.mrf.mxu0  ;;  %185 = vmatpush.bf16.msrb.mxu1 %v139_v19  ;;  %333 = vmatpush.bf16.msra.mxu2 %v139_v19 }
  0x9f   :  { %334 = vmatpush.bf16.msra.mxu3 %v139_v19  ;;  %v107_v23 = vmul.f32 0.5, %v91_v20 }
  0xa6   :  { %v94_v21 = vpop.f32.mrf.mxu0 }
  0xa7   :  { %v108_v22 = vmul.f32 0.5, %v94_v21 }
  0xa9   :  { %345 = vtanh.f32 %v108_v22 }
  0xaa   :  { %347 = vtanh.f32 %v107_v23 }
  0xab   :  { %349 = vtanh.f32 %v106_v24 }
  0xae   :  { %v96_v25 = vpop.f32.mrf.mxu0 }
  0xaf   :  { %v109_v27 = vmul.f32 0.5, %v96_v25  ;;  %v346_v29 = vpop.eup %345 }
  0xb0   :  { %v348_v30 = vpop.eup %347  ;;  %v124_v32 = vmul.f32 0.5, %v346_v29 }
  0xb1   :  { %351 = vtanh.f32 %v109_v27  ;;  %v350_v31 = vpop.eup %349  ;;  %v123_v34 = vmul.f32 0.5, %v348_v30 }
  0xb2   :  { %353 = vtanh.f32 %v105_v26  ;;  %v122_v37 = vmul.f32 0.5, %v350_v31  ;;  %v132_v38 = vadd.f32 0.5, %v124_v32 }
  0xb3   :  { %355 = vtanh.f32 %v104_v28  ;;  %v131_v42 = vadd.f32 0.5, %v123_v34  ;;  %v246_v34 = vld [vmem:[%s444_s3] sm:$0x1] }
  0xb4   :  { %v130_v45 = vadd.f32 0.5, %v122_v37 }
  0xb6   :  { %v137_v47 = vpack.c.bf16 %v131_v42, %v130_v45 }
  0xb7   :  { %v352_v33 = vpop.eup %351 }
  0xb8   :  { %v125_v35 = vmul.f32 0.5, %v352_v33  ;;  %v354_v36 = vpop.eup %353 }
  0xb9   :  { %v356_v40 = vpop.eup %355  ;;  %v121_v41 = vmul.f32 0.5, %v354_v36 }
  0xba   :  { %v133_v39 = vadd.f32 0.5, %v125_v35  ;;  %v120_v44 = vmul.f32 0.5, %v356_v40 }
  0xbb   :  { %v129_v46 = vadd.f32 0.5, %v121_v41 }
  0xbc   :  { %v138_v43 = vpack.c.bf16 %v133_v39, %v132_v38  ;;  %v128_v48 = vadd.f32 0.5, %v120_v44 }
  0xbe   :  { %186 = vmatpush.bf16.msrb.mxu1 %v138_v43  ;;  %335 = vmatpush.bf16.msra.mxu2 %v138_v43  ;;  %v136_v49 = vpack.c.bf16 %v129_v46, %v128_v48 }
  0xbf   :  { %336 = vmatpush.bf16.msra.mxu3 %v138_v43 }
  0xc2   :  { %187 = vmatpush.bf16.msrb.mxu1 %v137_v47  ;;  %337 = vmatpush.bf16.msra.mxu2 %v137_v47 }
  0xc3   :  { %338 = vmatpush.bf16.msra.mxu3 %v137_v47 }
  0xc6   :  { %188 = vmatpush.bf16.msrb.mxu1 %v136_v49  ;;  %339 = vmatpush.bf16.msra.mxu2 %v136_v49 }
  0xc7   :  { %340 = vmatpush.bf16.msra.mxu3 %v136_v49 }
  0xc9   :  { %317 = vmatmul.msk.bf16.vlgmr.msra.gmra.mxu2 %vm168_vm1, %v328_v50  ;;  %316 = vmatmul.msk.bf16.vlgmr.msrb.gmra.mxu1 %vm168_vm1, %v327_v51 }
  0xca   :  { %318 = vmatmul.msk.bf16.vlgmr.msra.gmra.mxu3 %vm168_vm1, %v329_v52 }
  0xda   :  { %319 = vmatmul.msk.bf16.gmra.mxu3 %vm168_vm1, %v330_v53 }
 0x146   :  { %v190_v58 = vpop.f32.mrf.mxu1 }
 0x147   :  { %v210_v4 = vmul.f32 0.5, %v190_v58 }
 0x14c   :  { %v195_v56 = vpop.f32.mrf.mxu2 }
 0x14d   :  { %v200_v54 = vpop.f32.mrf.mxu3  ;;  %v212_v63 = vmul.f32 0.5, %v195_v56 }
 0x14e   :  { %v214_v61 = vmul.f32 0.5, %v200_v54  ;;  %v192_v3 = vpop.f32.mrf.mxu1 }
 0x14f   :  { %v211_v6 = vmul.f32 0.5, %v192_v3 }
 0x154   :  { %v197_v62 = vpop.f32.mrf.mxu2 }
 0x155   :  { %v202_v55 = vpop.f32.mrf.mxu3  ;;  %v213_v1 = vmul.f32 0.5, %v197_v62 }
 0x156   :  { %v215_v60 = vmul.f32 0.5, %v202_v55 }
 0x15d   :  { %v205_v57 = vpop.f32.mrf.mxu3 }
 0x15e   :  { %v216_v59 = vmul.f32 0.5, %v205_v57 }
 0x160   :  { %357 = vtanh.f32 %v216_v59 }
 0x161   :  { %359 = vtanh.f32 %v215_v60 }
 0x162   :  { %361 = vtanh.f32 %v214_v61 }
 0x165   :  { %v207_v0 = vpop.f32.mrf.mxu3 }
 0x166   :  { %v217_v2 = vmul.f32 0.5, %v207_v0  ;;  %v358_v5 = vpop.eup %357 }
 0x167   :  { %v360_v7 = vpop.eup %359  ;;  %v232_v9 = vmul.f32 0.5, %v358_v5 }
 0x168   :  { %363 = vtanh.f32 %v217_v2  ;;  %v362_v8 = vpop.eup %361  ;;  %v231_v12 = vmul.f32 0.5, %v360_v7 }
 0x169   :  { %365 = vtanh.f32 %v212_v63  ;;  %v230_v15 = vmul.f32 0.5, %v362_v8  ;;  %v240_v16 = vadd.f32 0.5, %v232_v9 }
 0x16a   :  { %367 = vtanh.f32 %v213_v1  ;;  %v239_v19 = vadd.f32 0.5, %v231_v12 }
 0x16b   :  { %369 = vtanh.f32 %v210_v4  ;;  %v238_v24 = vadd.f32 0.5, %v230_v15 }
 0x16c   :  { %371 = vtanh.f32 %v211_v6 }
 0x16d   :  { %v244_v29 = vpack.c.bf16 %v239_v19, %v238_v24 }
 0x16e   :  { %v364_v10 = vpop.eup %363 }
 0x16f   :  { %v366_v11 = vpop.eup %365  ;;  %v233_v13 = vmul.f32 0.5, %v364_v10 }
 0x170   :  { %v368_v14 = vpop.eup %367  ;;  %v228_v20 = vmul.f32 0.5, %v366_v11 }
 0x171   :  { %v241_v17 = vadd.f32 0.5, %v233_v13  ;;  %v370_v18 = vpop.eup %369  ;;  %v229_v21 = vmul.f32 0.5, %v368_v14 }
 0x172   :  { %v372_v23 = vpop.eup %371  ;;  %v226_v25 = vmul.f32 0.5, %v370_v18  ;;  %v236_v26 = vadd.f32 0.5, %v228_v20 }
 0x173   :  { %v245_v22 = vpack.c.bf16 %v241_v17, %v240_v16  ;;  %v237_v27 = vadd.f32 0.5, %v229_v21  ;;  %v227_v28 = vmul.f32 0.5, %v372_v23 }
 0x174   :  { %v234_v30 = vadd.f32 0.5, %v226_v25 }
 0x175   :  { %254 = vmatpush.bf16.msrb.mxu2 %v245_v22  ;;  %v235_v31 = vadd.f32 0.5, %v227_v28  ;;  %v243_v32 = vpack.c.bf16 %v237_v27, %v236_v26 }
 0x177   :  { %v242_v33 = vpack.c.bf16 %v235_v31, %v234_v30 }
 0x179   :  { %255 = vmatpush.bf16.msrb.mxu2 %v244_v29 }
 0x17d   :  { %256 = vmatpush.bf16.msrb.mxu2 %v243_v32 }
 0x181   :  { %257 = vmatpush.bf16.msrb.mxu2 %v242_v33 }
 0x184   :  { %320 = vmatmul.msk.bf16.vlgmr.msrb.gmra.mxu2 %vm168_vm1, %v246_v34 }
 0x207   :  { %v259_v35 = vpop.f32.mrf.mxu2 }
 0x208   :  { %v263_v36 = vmul.f32 0.5, %v259_v35 }
 0x20a   :  { %373 = vtanh.f32 %v263_v36 }
 0x20f   :  { %v261_v37 = vpop.f32.mrf.mxu2 }
 0x210   :  { %v374_v38 = vpop.eup %373 }
 0x211   :  { %v265_v39 = vmul.f32 0.5, %v374_v38 }
 0x213   :  { %v266_v40 = vadd.f32 0.5, %v265_v39 }
 0x215   :  { %267 = vst [vmem:[%s445_s4] sm:$0x1] %v266_v40 }

</bundles_post_ra>
